<compile_context>
chip_gen: v7x
topology: tpu7x:2x2x1
jax: 0.10.0
libtpu: 0.0.40
codegen_flags: <defaults>
</compile_context>

<pallas_src>
import functools

import jax
import jax.numpy as jnp
from jax import lax
from jax.experimental import pallas as pl
from jax.experimental.pallas import tpu as pltpu


# --------------------------------------------------------------- utilities
def _pick_lane_tile(n, rows, max_tile=2048, max_bytes=2 * 1024 * 1024):
    """Largest power-of-two multiple of 128 dividing n, under size caps.

    Falls back to the full extent n (a full-dim block is always legal), so we
    never violate the (8, 128) block constraint — this replaces the old
    tile-halving loop that could drop below 8 rows.
    """
    cap = max(128, max_bytes // (4 * max(int(rows), 1)))
    best = None
    t = 128
    while t <= n and t <= max_tile and t <= cap:
        if n % t == 0:
            best = t
        t *= 2
    return best if best is not None else n


# --------------------------------------------------------------- LayerNorm
def _ln_withbias_kernel(x_ref, w_ref, b_ref, o_ref):
    x = x_ref[...].astype(jnp.float32)                         # (C, T)
    mu = jnp.mean(x, axis=0, keepdims=True)                    # reduce over C
    var = jnp.mean(x * x, axis=0, keepdims=True) - mu * mu     # one-pass var
    y = (x - mu) * lax.rsqrt(var + 1e-5)
    y = y * w_ref[...].astype(jnp.float32) + b_ref[...].astype(jnp.float32)
    o_ref[...] = y.astype(o_ref.dtype)


def _ln_biasfree_kernel(x_ref, w_ref, o_ref):
    x = x_ref[...].astype(jnp.float32)                         # (C, T)
    mu = jnp.mean(x, axis=0, keepdims=True)
    var = jnp.mean(x * x, axis=0, keepdims=True) - mu * mu
    # NOTE: BiasFree variant scales x itself (no mean subtraction in output),
    # while the variance is still taken around the mean — matches Restormer.
    y = x * lax.rsqrt(var + 1e-5) * w_ref[...].astype(jnp.float32)
    o_ref[...] = y.astype(o_ref.dtype)


def layernorm_cfirst(x3, weight, bias, ln_type):
    """Channel LayerNorm on a (B, C, HW) tensor (Restormer to_3d semantics)."""
    b, c, hw = x3.shape
    t = _pick_lane_tile(hw, c)
    grid = (b, hw // t)
    x_spec = pl.BlockSpec((None, c, t), lambda i, j: (i, 0, j))
    p_spec = pl.BlockSpec((c, 1), lambda i, j: (0, 0))
    o_spec = pl.BlockSpec((None, c, t), lambda i, j: (i, 0, j))
    cparams = pltpu.CompilerParams(dimension_semantics=("parallel", "parallel"))
    out_shape = jax.ShapeDtypeStruct((b, c, hw), x3.dtype)
    w2 = weight.reshape(c, 1)
    if ln_type == "BiasFree":
        return pl.pallas_call(
            _ln_biasfree_kernel, out_shape=out_shape, grid=grid,
            in_specs=[x_spec, p_spec], out_specs=o_spec,
            compiler_params=cparams)(x3, w2)
    return pl.pallas_call(
        _ln_withbias_kernel, out_shape=out_shape, grid=grid,
        in_specs=[x_spec, p_spec, p_spec], out_specs=o_spec,
        compiler_params=cparams)(x3, w2, bias.reshape(c, 1))


# --------------------------------------------------------- 1x1 conv (MXU)
def _pw_kernel(x_ref, w_ref, b_ref, o_ref):
    y = jnp.dot(w_ref[...].astype(jnp.float32), x_ref[...].astype(jnp.float32),
                preferred_element_type=jnp.float32)
    y = y + b_ref[...].astype(jnp.float32)
    o_ref[...] = y.astype(o_ref.dtype)


def _pw_res_kernel(x_ref, w_ref, b_ref, r_ref, o_ref):
    y = jnp.dot(w_ref[...].astype(jnp.float32), x_ref[...].astype(jnp.float32),
                preferred_element_type=jnp.float32)
    y = y + b_ref[...].astype(jnp.float32) + r_ref[...].astype(jnp.float32)
    o_ref[...] = y.astype(o_ref.dtype)


def conv1x1(x3, w, b, residual=None):
    """1x1 conv on (B, Cin, HW): out[i] = w @ x[i] + bias (+ fused residual)."""
    bsz, cin, hw = x3.shape
    cout = w.shape[0]
    t = _pick_lane_tile(hw, max(cin, cout))
    grid = (bsz, hw // t)
    x_spec = pl.BlockSpec((None, cin, t), lambda i, j: (i, 0, j))
    w_spec = pl.BlockSpec((cout, cin), lambda i, j: (0, 0))
    b_spec = pl.BlockSpec((cout, 1), lambda i, j: (0, 0))
    o_spec = pl.BlockSpec((None, cout, t), lambda i, j: (i, 0, j))
    cparams = pltpu.CompilerParams(dimension_semantics=("parallel", "parallel"))
    out_shape = jax.ShapeDtypeStruct((bsz, cout, hw), x3.dtype)
    b2 = b.reshape(cout, 1)
    if residual is None:
        return pl.pallas_call(
            _pw_kernel, out_shape=out_shape, grid=grid,
            in_specs=[x_spec, w_spec, b_spec], out_specs=o_spec,
            compiler_params=cparams)(x3, w, b2)
    r_spec = pl.BlockSpec((None, cout, t), lambda i, j: (i, 0, j))
    return pl.pallas_call(
        _pw_res_kernel, out_shape=out_shape, grid=grid,
        in_specs=[x_spec, w_spec, b_spec, r_spec], out_specs=o_spec,
        compiler_params=cparams)(x3, w, b2, residual)


# ------------------------------------------------- channel attention core
def _attn_kernel(q_ref, k_ref, v_ref, t_ref, o_ref):
    q = q_ref[...].astype(jnp.float32)                         # (ch, HW)
    k = k_ref[...].astype(jnp.float32)
    v = v_ref[...].astype(jnp.float32)
    # F.normalize(dim=-1):  x / max(||x||_2, 1e-12)
    qn = q / jnp.maximum(jnp.sqrt(jnp.sum(q * q, axis=-1, keepdims=True)), 1e-12)
    kn = k / jnp.maximum(jnp.sqrt(jnp.sum(k * k, axis=-1, keepdims=True)), 1e-12)
    logits = lax.dot_general(qn, kn, (((1,), (1,)), ((), ())),
                             preferred_element_type=jnp.float32)   # (ch, ch)
    logits = logits * t_ref[...].astype(jnp.float32)               # temperature
    m = jnp.max(logits, axis=-1, keepdims=True)
    e = jnp.exp(logits - m)
    attn = e / jnp.sum(e, axis=-1, keepdims=True)
    out = jnp.dot(attn, v, preferred_element_type=jnp.float32)     # (ch, HW)
    o_ref[...] = out.astype(o_ref.dtype)


def attention_core(q, k, v, temperature):
    """q, k, v: (B, heads, c_head, HW);  temperature: (heads,)."""
    bsz, nh, ch, hw = q.shape
    qkv_spec = pl.BlockSpec((None, None, ch, hw), lambda i, j: (i, j, 0, 0))
    t_spec = pl.BlockSpec((None, 1, 1), lambda i, j: (j, 0, 0))
    o_spec = pl.BlockSpec((None, None, ch, hw), lambda i, j: (i, j, 0, 0))
    cparams = pltpu.CompilerParams(dimension_semantics=("parallel", "parallel"))
    return pl.pallas_call(
        _attn_kernel, out_shape=jax.ShapeDtypeStruct(q.shape, q.dtype),
        grid=(bsz, nh), in_specs=[qkv_spec, qkv_spec, qkv_spec, t_spec],
        out_specs=o_spec, compiler_params=cparams)(
            q, k, v, temperature.reshape(nh, 1, 1))


# --------------------------------------------------- 3x3 depthwise conv
def _dwconv3x3(x, w, b):
    """Depthwise 3x3 conv, NCHW, padding=1.  x:(B,C,H,W) w:(C,1,3,3) b:(C,)."""
    # TODO(synk): port the 3x3 depthwise conv to a Pallas kernel (needs
    # shifted-tap loads / lane rotates); XLA's grouped conv is used for now,
    # kept in NCHW so no extra layout transposes are introduced.
    y = lax.conv_general_dilated(
        x, w, window_strides=(1, 1), padding=((1, 1), (1, 1)),
        dimension_numbers=("NCHW", "OIHW", "NCHW"),
        feature_group_count=x.shape[1])
    return y + b.reshape(1, -1, 1, 1)


# ------------------------------------------------------- TransformerBlock
@functools.partial(jax.jit, static_argnames=("num_heads", "ln_type"))
def transformer_block(x, params, num_heads, ln_type="WithBias"):
    b, c, h, w = x.shape
    hw = h * w
    ch = c // num_heads
    x3 = x.reshape(b, c, hw)                 # contiguous view of NCHW — free

    # ---- x = x + attn(norm1(x)) --------------------------------------
    n1 = layernorm_cfirst(x3, params["ln1_w"], params["ln1_b"], ln_type)
    qkv = conv1x1(n1, params["w_qkv"], params["b_qkv"])          # (b, 3c, hw)
    qkv = _dwconv3x3(qkv.reshape(b, 3 * c, h, w),
                     params["w_qkv_dw"], params["b_qkv_dw"])
    qkv = qkv.reshape(b, 3, num_heads, ch, hw)
    attn = attention_core(qkv[:, 0], qkv[:, 1], qkv[:, 2],
                          params["temperature"])                 # (b,nh,ch,hw)
    x3 = conv1x1(attn.reshape(b, c, hw), params["w_proj"], params["b_proj"],
                 residual=x3)                                    # fused +x

    # ---- x = x + ffn(norm2(x)) ---------------------------------------
    n2 = layernorm_cfirst(x3, params["ln2_w"], params["ln2_b"], ln_type)
    h2 = conv1x1(n2, params["w_in"], params["b_in"])             # (b,2*hid,hw)
    nh2 = h2.shape[1]
    hid = nh2 // 2
    h2 = _dwconv3x3(h2.reshape(b, nh2, h, w),
                    params["w_ffn_dw"], params["b_ffn_dw"]).reshape(b, nh2, hw)
    gated = jax.nn.gelu(h2[:, :hid], approximate=False) * h2[:, hid:]
    x3 = conv1x1(gated, params["w_out"], params["b_out"], residual=x3)
    return x3.reshape(b, c, h, w)


# ---------------------------------------------------------- JAX reference
def _ref_block(x, p, num_heads, ln_type):
    b, c, h, w = x.shape

    def ln(t, wt, bt):
        xt = jnp.transpose(t, (0, 2, 3, 1)).astype(jnp.float32)
        mu = jnp.mean(xt, -1, keepdims=True)
        var = jnp.mean((xt - mu) ** 2, -1, keepdims=True)
        if ln_type == "BiasFree":
            y = xt / jnp.sqrt(var + 1e-5) * wt
        else:
            y = (xt - mu) / jnp.sqrt(var + 1e-5) * wt + bt
        return jnp.transpose(y, (0, 3, 1, 2)).astype(t.dtype)

    def pw(t, wt, bt):
        y = lax.conv_general_dilated(
            t, wt.reshape(wt.shape[0], wt.shape[1], 1, 1), (1, 1), "VALID",
            dimension_numbers=("NCHW", "OIHW", "NCHW"))
        return y + bt.reshape(1, -1, 1, 1)

    y = ln(x, p["ln1_w"], p["ln1_b"])
    qkv = _dwconv3x3(pw(y, p["w_qkv"], p["b_qkv"]),
                     p["w_qkv_dw"], p["b_qkv_dw"])
    q, k, v = jnp.split(qkv, 3, axis=1)
    heads = lambda t: t.reshape(b, num_heads, c // num_heads, h * w)
    q, k, v = heads(q), heads(k), heads(v)
    qn = q / jnp.maximum(jnp.linalg.norm(q, axis=-1, keepdims=True), 1e-12)
    kn = k / jnp.maximum(jnp.linalg.norm(k, axis=-1, keepdims=True), 1e-12)
    logits = jnp.einsum("bncd,bned->bnce", qn, kn)
    logits = logits * p["temperature"].reshape(1, num_heads, 1, 1)
    attn = jax.nn.softmax(logits, axis=-1)
    out = jnp.einsum("bnce,bned->bncd", attn, v).reshape(b, c, h, w)
    x = x + pw(out, p["w_proj"], p["b_proj"])

    y = ln(x, p["ln2_w"], p["ln2_b"])
    h2 = _dwconv3x3(pw(y, p["w_in"], p["b_in"]),
                    p["w_ffn_dw"], p["b_ffn_dw"])
    hid = h2.shape[1] // 2
    g = jax.nn.gelu(h2[:, :hid], approximate=False) * h2[:, hid:]
    x = x + pw(g, p["w_out"], p["b_out"])
    return x


if __name__ == "__main__":
    B, C, H, W = 2, 8, 16, 16
    NUM_HEADS = 2
    FFN_FACTOR = 2.0
    HIDDEN = int(C * FFN_FACTOR)

    key = jax.random.PRNGKey(0)
    ks = jax.random.split(key, 18)

    def rnd(k, shape, scale=0.2):
        return scale * jax.random.normal(k, shape, dtype=jnp.float32)

    x = jax.random.normal(ks[0], (B, C, H, W), dtype=jnp.float32)
    params = {
        "ln1_w": 1.0 + rnd(ks[1], (C,), 0.1),
        "ln1_b": rnd(ks[2], (C,), 0.1),
        "ln2_w": 1.0 + rnd(ks[3], (C,), 0.1),
        "ln2_b": rnd(ks[4], (C,), 0.1),
        "w_qkv": rnd(ks[5], (3 * C, C)),
        "b_qkv": rnd(ks[6], (3 * C,), 0.05),
        "w_qkv_dw": rnd(ks[7], (3 * C, 1, 3, 3)),
        "b_qkv_dw": rnd(ks[8], (3 * C,), 0.05),
        "temperature": 1.0 + rnd(ks[9], (NUM_HEADS,), 0.1),
        "w_proj": rnd(ks[10], (C, C)),
        "b_proj": rnd(ks[11], (C,), 0.05),
        "w_in": rnd(ks[12], (2 * HIDDEN, C)),
        "b_in": rnd(ks[13], (2 * HIDDEN,), 0.05),
        "w_ffn_dw": rnd(ks[14], (2 * HIDDEN, 1, 3, 3)),
        "b_ffn_dw": rnd(ks[15], (2 * HIDDEN,), 0.05),
        "w_out": rnd(ks[16], (C, HIDDEN)),
        "b_out": rnd(ks[17], (C,), 0.05),
    }

    out = transformer_block(x, params, num_heads=NUM_HEADS, ln_type="WithBias")
    out = jax.block_until_ready(out)
    ref = _ref_block(x, params, NUM_HEADS, "WithBias")

    ok = out.shape == x.shape
    ok = ok and bool(jnp.allclose(out, ref, atol=5e-3, rtol=5e-3))

    # Also exercise the BiasFree LayerNorm kernel path on its own.
    ln_bf = layernorm_cfirst(x.reshape(B, C, H * W), params["ln1_w"],
                             params["ln1_b"], "BiasFree").reshape(B, C, H, W)
    xt = jnp.transpose(x, (0, 2, 3, 1))
    var = jnp.var(xt, axis=-1, keepdims=True)
    ln_bf_ref = jnp.transpose(
        xt / jnp.sqrt(var + 1e-5) * params["ln1_w"], (0, 3, 1, 2))
    ok = ok and bool(jnp.allclose(ln_bf, ln_bf_ref, atol=1e-4, rtol=1e-4))

    if ok:
        print("KERNEL_OK")
    else:
        print("MISMATCH: max_abs_err=%e" %
              float(jnp.max(jnp.abs(out - ref))))
</pallas_src>

<mosaic_0001>
module attributes {stable_mosaic.version = 11 : i64} {
  func.func @_ln_withbias_kernel(%arg0: i32, %arg1: i32, %arg2: memref<1x8x256xf32, #tpu.memory_space<vmem>>, %arg3: memref<8x1xf32, #tpu.memory_space<vmem>>, %arg4: memref<8x1xf32, #tpu.memory_space<vmem>>, %arg5: memref<1x8x256xf32, #tpu.memory_space<vmem>>) attributes {dimension_semantics = [#tpu.dimension_semantics<parallel>, #tpu.dimension_semantics<parallel>], iteration_bounds = array<i64: 2, 1>, scalar_prefetch = 0 : i64, scratch_operands = 0 : i64, tpu.core_type = #tpu.core_type<tc>, window_params = [{transform_indices = @transform_0, window_bounds = array<i64: 1, 8, 256>}, {pipeline_mode = #tpu.pipeline_mode<synchronous>, transform_indices = @transform_1, window_bounds = array<i64: 8, 1>}, {pipeline_mode = #tpu.pipeline_mode<synchronous>, transform_indices = @transform_2, window_bounds = array<i64: 8, 1>}, {transform_indices = @transform_3, window_bounds = array<i64: 1, 8, 256>}]} {
    %c0 = arith.constant 0 : index
    %c0_0 = arith.constant 0 : index
    %c0_1 = arith.constant 0 : index
    %0 = vector.load %arg2[%c0, %c0_0, %c0_1] : memref<1x8x256xf32, #tpu.memory_space<vmem>>, vector<1x8x256xf32>
    %1 = vector.shape_cast %0 : vector<1x8x256xf32> to vector<8x256xf32>
    %cst = arith.constant dense<0.000000e+00> : vector<256xf32>
    %2 = vector.multi_reduction <add>, %1, %cst [0] : vector<8x256xf32> to vector<256xf32>
    %3 = vector.shape_cast %2 : vector<256xf32> to vector<1x256xf32>
    %cst_2 = arith.constant 8.000000e+00 : f32
    %4 = vector.broadcast %cst_2 : f32 to vector<1x256xf32>
    %5 = arith.divf %3, %4 : vector<1x256xf32>
    %6 = arith.mulf %1, %1 : vector<8x256xf32>
    %cst_3 = arith.constant dense<0.000000e+00> : vector<256xf32>
    %7 = vector.multi_reduction <add>, %6, %cst_3 [0] : vector<8x256xf32> to vector<256xf32>
    %8 = vector.shape_cast %7 : vector<256xf32> to vector<1x256xf32>
    %cst_4 = arith.constant 8.000000e+00 : f32
    %9 = vector.broadcast %cst_4 : f32 to vector<1x256xf32>
    %10 = arith.divf %8, %9 : vector<1x256xf32>
    %11 = arith.mulf %5, %5 : vector<1x256xf32>
    %12 = arith.subf %10, %11 : vector<1x256xf32>
    %13 = vector.broadcast %5 : vector<1x256xf32> to vector<8x256xf32>
    %14 = arith.subf %1, %13 : vector<8x256xf32>
    %cst_5 = arith.constant 9.99999974E-6 : f32
    %15 = vector.broadcast %cst_5 : f32 to vector<1x256xf32>
    %16 = arith.addf %12, %15 : vector<1x256xf32>
    %17 = math.rsqrt %16 : vector<1x256xf32>
    %18 = vector.broadcast %17 : vector<1x256xf32> to vector<8x256xf32>
    %19 = arith.mulf %14, %18 : vector<8x256xf32>
    %c0_6 = arith.constant 0 : index
    %c0_7 = arith.constant 0 : index
    %20 = vector.load %arg3[%c0_6, %c0_7] : memref<8x1xf32, #tpu.memory_space<vmem>>, vector<8x1xf32>
    %21 = vector.broadcast %20 : vector<8x1xf32> to vector<8x256xf32>
    %22 = arith.mulf %19, %21 : vector<8x256xf32>
    %c0_8 = arith.constant 0 : index
    %c0_9 = arith.constant 0 : index
    %23 = vector.load %arg4[%c0_8, %c0_9] : memref<8x1xf32, #tpu.memory_space<vmem>>, vector<8x1xf32>
    %24 = vector.broadcast %23 : vector<8x1xf32> to vector<8x256xf32>
    %25 = arith.addf %22, %24 : vector<8x256xf32>
    %c0_10 = arith.constant 0 : index
    %c0_11 = arith.constant 0 : index
    %c0_12 = arith.constant 0 : index
    %26 = vector.load %arg5[%c0_10, %c0_11, %c0_12] : memref<1x8x256xf32, #tpu.memory_space<vmem>>, vector<1x8x256xf32>
    %27 = vector.shape_cast %26 : vector<1x8x256xf32> to vector<8x256xf32>
    %28 = vector.shape_cast %25 : vector<8x256xf32> to vector<1x8x256xf32>
    tpu.vector_store %arg5[%c0_10, %c0_11, %c0_12], %28 {strides = array<i32>} : memref<1x8x256xf32, #tpu.memory_space<vmem>>, vector<1x8x256xf32>,
    return
  }
  func.func @transform_0(%arg0: i32, %arg1: i32) -> (i32, i32, i32) {
    %c0_i32 = arith.constant 0 : i32
    %c0_i32_0 = arith.constant 0 : i32
    return %arg0, %c0_i32, %arg1 : i32, i32, i32
  }
  func.func @transform_1(%arg0: i32, %arg1: i32) -> (i32, i32) {
    %c0_i32 = arith.constant 0 : i32
    %c0_i32_0 = arith.constant 0 : i32
    %c0_i32_1 = arith.constant 0 : i32
    return %c0_i32, %c0_i32_0 : i32, i32
  }
  func.func @transform_2(%arg0: i32, %arg1: i32) -> (i32, i32) {
    %c0_i32 = arith.constant 0 : i32
    %c0_i32_0 = arith.constant 0 : i32
    %c0_i32_1 = arith.constant 0 : i32
    return %c0_i32, %c0_i32_0 : i32, i32
  }
  func.func @transform_3(%arg0: i32, %arg1: i32) -> (i32, i32, i32) {
    %c0_i32 = arith.constant 0 : i32
    %c0_i32_0 = arith.constant 0 : i32
    return %arg0, %c0_i32, %arg1 : i32, i32, i32
  }
}

module attributes {stable_mosaic.version = 11 : i64} {
  func.func @_pw_kernel(%arg0: i32, %arg1: i32, %arg2: memref<1x8x256xf32, #tpu.memory_space<vmem>>, %arg3: memref<24x8xf32, #tpu.memory_space<vmem>>, %arg4: memref<24x1xf32, #tpu.memory_space<vmem>>, %arg5: memref<1x24x256xf32, #tpu.memory_space<vmem>>) attributes {dimension_semantics = [#tpu.dimension_semantics<parallel>, #tpu.dimension_semantics<parallel>], iteration_bounds = array<i64: 2, 1>, scalar_prefetch = 0 : i64, scratch_operands = 0 : i64, tpu.core_type = #tpu.core_type<tc>, window_params = [{transform_indices = @transform_0, window_bounds = array<i64: 1, 8, 256>}, {pipeline_mode = #tpu.pipeline_mode<synchronous>, transform_indices = @transform_1, window_bounds = array<i64: 24, 8>}, {pipeline_mode = #tpu.pipeline_mode<synchronous>, transform_indices = @transform_2, window_bounds = array<i64: 24, 1>}, {transform_indices = @transform_3, window_bounds = array<i64: 1, 24, 256>}]} {
    %c0 = arith.constant 0 : index
    %c0_0 = arith.constant 0 : index
    %0 = vector.load %arg3[%c0, %c0_0] : memref<24x8xf32, #tpu.memory_space<vmem>>, vector<24x8xf32>
    %c0_1 = arith.constant 0 : index
    %c0_2 = arith.constant 0 : index
    %c0_3 = arith.constant 0 : index
    %1 = vector.load %arg2[%c0_1, %c0_2, %c0_3] : memref<1x8x256xf32, #tpu.memory_space<vmem>>, vector<1x8x256xf32>
    %2 = vector.shape_cast %1 : vector<1x8x256xf32> to vector<8x256xf32>
    %cst = arith.constant dense<0.000000e+00> : vector<24x256xf32>
    %3 = tpu.matmul %0, %2, %cst {dimension_numbers = #tpu.dot_dimension_numbers<[1], [0], [0], [1], [0, 0, 1, 1], [], []>} : vector<24x8xf32>, vector<8x256xf32>, vector<24x256xf32> -> vector<24x256xf32>
    %c0_4 = arith.constant 0 : index
    %c0_5 = arith.constant 0 : index
    %4 = vector.load %arg4[%c0_4, %c0_5] : memref<24x1xf32, #tpu.memory_space<vmem>>, vector<24x1xf32>
    %5 = vector.broadcast %4 : vector<24x1xf32> to vector<24x256xf32>
    %6 = arith.addf %3, %5 : vector<24x256xf32>
    %c0_6 = arith.constant 0 : index
    %c0_7 = arith.constant 0 : index
    %c0_8 = arith.constant 0 : index
    %7 = vector.load %arg5[%c0_6, %c0_7, %c0_8] : memref<1x24x256xf32, #tpu.memory_space<vmem>>, vector<1x24x256xf32>
    %8 = vector.shape_cast %7 : vector<1x24x256xf32> to vector<24x256xf32>
    %9 = vector.shape_cast %6 : vector<24x256xf32> to vector<1x24x256xf32>
    tpu.vector_store %arg5[%c0_6, %c0_7, %c0_8], %9 {strides = array<i32>} : memref<1x24x256xf32, #tpu.memory_space<vmem>>, vector<1x24x256xf32>,
    return
  }
  func.func @transform_0(%arg0: i32, %arg1: i32) -> (i32, i32, i32) {
    %c0_i32 = arith.constant 0 : i32
    %c0_i32_0 = arith.constant 0 : i32
    return %arg0, %c0_i32, %arg1 : i32, i32, i32
  }
  func.func @transform_1(%arg0: i32, %arg1: i32) -> (i32, i32) {
    %c0_i32 = arith.constant 0 : i32
    %c0_i32_0 = arith.constant 0 : i32
    %c0_i32_1 = arith.constant 0 : i32
    return %c0_i32, %c0_i32_0 : i32, i32
  }
  func.func @transform_2(%arg0: i32, %arg1: i32) -> (i32, i32) {
    %c0_i32 = arith.constant 0 : i32
    %c0_i32_0 = arith.constant 0 : i32
    %c0_i32_1 = arith.constant 0 : i32
    return %c0_i32, %c0_i32_0 : i32, i32
  }
  func.func @transform_3(%arg0: i32, %arg1: i32) -> (i32, i32, i32) {
    %c0_i32 = arith.constant 0 : i32
    %c0_i32_0 = arith.constant 0 : i32
    return %arg0, %c0_i32, %arg1 : i32, i32, i32
  }
}

module attributes {stable_mosaic.version = 11 : i64} {
  func.func @_attn_kernel(%arg0: i32, %arg1: i32, %arg2: memref<1x1x4x256xf32, #tpu.memory_space<vmem>>, %arg3: memref<1x1x4x256xf32, #tpu.memory_space<vmem>>, %arg4: memref<1x1x4x256xf32, #tpu.memory_space<vmem>>, %arg5: memref<1x1x1xf32, #tpu.memory_space<vmem>>, %arg6: memref<1x1x4x256xf32, #tpu.memory_space<vmem>>) attributes {dimension_semantics = [#tpu.dimension_semantics<parallel>, #tpu.dimension_semantics<parallel>], iteration_bounds = array<i64: 2, 2>, scalar_prefetch = 0 : i64, scratch_operands = 0 : i64, tpu.core_type = #tpu.core_type<tc>, window_params = [{transform_indices = @transform_0, window_bounds = array<i64: 1, 1, 4, 256>}, {transform_indices = @transform_1, window_bounds = array<i64: 1, 1, 4, 256>}, {transform_indices = @transform_2, window_bounds = array<i64: 1, 1, 4, 256>}, {transform_indices = @transform_3, window_bounds = array<i64: 1, 1, 1>}, {transform_indices = @transform_4, window_bounds = array<i64: 1, 1, 4, 256>}]} {
    %c0 = arith.constant 0 : index
    %c0_0 = arith.constant 0 : index
    %c0_1 = arith.constant 0 : index
    %c0_2 = arith.constant 0 : index
    %0 = vector.load %arg2[%c0, %c0_0, %c0_1, %c0_2] : memref<1x1x4x256xf32, #tpu.memory_space<vmem>>, vector<1x1x4x256xf32>
    %1 = vector.shape_cast %0 : vector<1x1x4x256xf32> to vector<4x256xf32>
    %c0_3 = arith.constant 0 : index
    %c0_4 = arith.constant 0 : index
    %c0_5 = arith.constant 0 : index
    %c0_6 = arith.constant 0 : index
    %2 = vector.load %arg3[%c0_3, %c0_4, %c0_5, %c0_6] : memref<1x1x4x256xf32, #tpu.memory_space<vmem>>, vector<1x1x4x256xf32>
    %3 = vector.shape_cast %2 : vector<1x1x4x256xf32> to vector<4x256xf32>
    %c0_7 = arith.constant 0 : index
    %c0_8 = arith.constant 0 : index
    %c0_9 = arith.constant 0 : index
    %c0_10 = arith.constant 0 : index
    %4 = vector.load %arg4[%c0_7, %c0_8, %c0_9, %c0_10] : memref<1x1x4x256xf32, #tpu.memory_space<vmem>>, vector<1x1x4x256xf32>
    %5 = vector.shape_cast %4 : vector<1x1x4x256xf32> to vector<4x256xf32>
    %6 = arith.mulf %1, %1 : vector<4x256xf32>
    %cst = arith.constant dense<0.000000e+00> : vector<4xf32>
    %7 = vector.multi_reduction <add>, %6, %cst [1] : vector<4x256xf32> to vector<4xf32>
    %8 = vector.shape_cast %7 : vector<4xf32> to vector<4x1xf32>
    %9 = math.sqrt %8 : vector<4x1xf32>
    %cst_11 = arith.constant 9.99999996E-13 : f32
    %10 = vector.broadcast %cst_11 : f32 to vector<4x1xf32>
    %11 = arith.maximumf %9, %10 : vector<4x1xf32>
    %12 = vector.broadcast %11 : vector<4x1xf32> to vector<4x256xf32>
    %13 = arith.divf %1, %12 : vector<4x256xf32>
    %14 = arith.mulf %3, %3 : vector<4x256xf32>
    %cst_12 = arith.constant dense<0.000000e+00> : vector<4xf32>
    %15 = vector.multi_reduction <add>, %14, %cst_12 [1] : vector<4x256xf32> to vector<4xf32>
    %16 = vector.shape_cast %15 : vector<4xf32> to vector<4x1xf32>
    %17 = math.sqrt %16 : vector<4x1xf32>
    %cst_13 = arith.constant 9.99999996E-13 : f32
    %18 = vector.broadcast %cst_13 : f32 to vector<4x1xf32>
    %19 = arith.maximumf %17, %18 : vector<4x1xf32>
    %20 = vector.broadcast %19 : vector<4x1xf32> to vector<4x256xf32>
    %21 = arith.divf %3, %20 : vector<4x256xf32>
    %cst_14 = arith.constant dense<0.000000e+00> : vector<4x4xf32>
    %22 = tpu.matmul %13, %21, %cst_14 {dimension_numbers = #tpu.dot_dimension_numbers<[1], [1], [0], [0], [0, 0, 1, 0], [], []>} : vector<4x256xf32>, vector<4x256xf32>, vector<4x4xf32> -> vector<4x4xf32>
    %c0_15 = arith.constant 0 : index
    %c0_16 = arith.constant 0 : index
    %c0_17 = arith.constant 0 : index
    %23 = vector.load %arg5[%c0_15, %c0_16, %c0_17] : memref<1x1x1xf32, #tpu.memory_space<vmem>>, vector<1x1x1xf32>
    %24 = vector.shape_cast %23 : vector<1x1x1xf32> to vector<1x1xf32>
    %25 = vector.broadcast %24 : vector<1x1xf32> to vector<4x4xf32>
    %26 = arith.mulf %22, %25 : vector<4x4xf32>
    %cst_18 = arith.constant dense<0xFF800000> : vector<4xf32>
    %27 = vector.multi_reduction <maximumf>, %26, %cst_18 [1] : vector<4x4xf32> to vector<4xf32>
    %28 = vector.shape_cast %27 : vector<4xf32> to vector<4x1xf32>
    %29 = vector.broadcast %28 : vector<4x1xf32> to vector<4x4xf32>
    %30 = arith.subf %26, %29 : vector<4x4xf32>
    %31 = math.exp %30 : vector<4x4xf32>
    %cst_19 = arith.constant dense<0.000000e+00> : vector<4xf32>
    %32 = vector.multi_reduction <add>, %31, %cst_19 [1] : vector<4x4xf32> to vector<4xf32>
    %33 = vector.shape_cast %32 : vector<4xf32> to vector<4x1xf32>
    %34 = vector.broadcast %33 : vector<4x1xf32> to vector<4x4xf32>
    %35 = arith.divf %31, %34 : vector<4x4xf32>
    %cst_20 = arith.constant dense<0.000000e+00> : vector<4x256xf32>
    %36 = tpu.matmul %35, %5, %cst_20 {dimension_numbers = #tpu.dot_dimension_numbers<[1], [0], [0], [1], [0, 0, 1, 1], [], []>} : vector<4x4xf32>, vector<4x256xf32>, vector<4x256xf32> -> vector<4x256xf32>
    %c0_21 = arith.constant 0 : index
    %c0_22 = arith.constant 0 : index
    %c0_23 = arith.constant 0 : index
    %c0_24 = arith.constant 0 : index
    %37 = vector.load %arg6[%c0_21, %c0_22, %c0_23, %c0_24] : memref<1x1x4x256xf32, #tpu.memory_space<vmem>>, vector<1x1x4x256xf32>
    %38 = vector.shape_cast %37 : vector<1x1x4x256xf32> to vector<4x256xf32>
    %39 = vector.shape_cast %36 : vector<4x256xf32> to vector<1x1x4x256xf32>
    tpu.vector_store %arg6[%c0_21, %c0_22, %c0_23, %c0_24], %39 {strides = array<i32>} : memref<1x1x4x256xf32, #tpu.memory_space<vmem>>, vector<1x1x4x256xf32>,
    return
  }
  func.func @transform_0(%arg0: i32, %arg1: i32) -> (i32, i32, i32, i32) {
    %c0_i32 = arith.constant 0 : i32
    %c0_i32_0 = arith.constant 0 : i32
    %c0_i32_1 = arith.constant 0 : i32
    return %arg0, %arg1, %c0_i32, %c0_i32_0 : i32, i32, i32, i32
  }
  func.func @transform_1(%arg0: i32, %arg1: i32) -> (i32, i32, i32, i32) {
    %c0_i32 = arith.constant 0 : i32
    %c0_i32_0 = arith.constant 0 : i32
    %c0_i32_1 = arith.constant 0 : i32
    return %arg0, %arg1, %c0_i32, %c0_i32_0 : i32, i32, i32, i32
  }
  func.func @transform_2(%arg0: i32, %arg1: i32) -> (i32, i32, i32, i32) {
    %c0_i32 = arith.constant 0 : i32
    %c0_i32_0 = arith.constant 0 : i32
    %c0_i32_1 = arith.constant 0 : i32
    return %arg0, %arg1, %c0_i32, %c0_i32_0 : i32, i32, i32, i32
  }
  func.func @transform_3(%arg0: i32, %arg1: i32) -> (i32, i32, i32) {
    %c0_i32 = arith.constant 0 : i32
    %c0_i32_0 = arith.constant 0 : i32
    %c0_i32_1 = arith.constant 0 : i32
    return %arg1, %c0_i32, %c0_i32_0 : i32, i32, i32
  }
  func.func @transform_4(%arg0: i32, %arg1: i32) -> (i32, i32, i32, i32) {
    %c0_i32 = arith.constant 0 : i32
    %c0_i32_0 = arith.constant 0 : i32
    %c0_i32_1 = arith.constant 0 : i32
    return %arg0, %arg1, %c0_i32, %c0_i32_0 : i32, i32, i32, i32
  }
}

module attributes {stable_mosaic.version = 11 : i64} {
  func.func @_pw_res_kernel(%arg0: i32, %arg1: i32, %arg2: memref<1x8x256xf32, #tpu.memory_space<vmem>>, %arg3: memref<8x8xf32, #tpu.memory_space<vmem>>, %arg4: memref<8x1xf32, #tpu.memory_space<vmem>>, %arg5: memref<1x8x256xf32, #tpu.memory_space<vmem>>, %arg6: memref<1x8x256xf32, #tpu.memory_space<vmem>>) attributes {dimension_semantics = [#tpu.dimension_semantics<parallel>, #tpu.dimension_semantics<parallel>], iteration_bounds = array<i64: 2, 1>, scalar_prefetch = 0 : i64, scratch_operands = 0 : i64, tpu.core_type = #tpu.core_type<tc>, window_params = [{transform_indices = @transform_0, window_bounds = array<i64: 1, 8, 256>}, {pipeline_mode = #tpu.pipeline_mode<synchronous>, transform_indices = @transform_1, window_bounds = array<i64: 8, 8>}, {pipeline_mode = #tpu.pipeline_mode<synchronous>, transform_indices = @transform_2, window_bounds = array<i64: 8, 1>}, {transform_indices = @transform_3, window_bounds = array<i64: 1, 8, 256>}, {transform_indices = @transform_4, window_bounds = array<i64: 1, 8, 256>}]} {
    %c0 = arith.constant 0 : index
    %c0_0 = arith.constant 0 : index
    %0 = vector.load %arg3[%c0, %c0_0] : memref<8x8xf32, #tpu.memory_space<vmem>>, vector<8x8xf32>
    %c0_1 = arith.constant 0 : index
    %c0_2 = arith.constant 0 : index
    %c0_3 = arith.constant 0 : index
    %1 = vector.load %arg2[%c0_1, %c0_2, %c0_3] : memref<1x8x256xf32, #tpu.memory_space<vmem>>, vector<1x8x256xf32>
    %2 = vector.shape_cast %1 : vector<1x8x256xf32> to vector<8x256xf32>
    %cst = arith.constant dense<0.000000e+00> : vector<8x256xf32>
    %3 = tpu.matmul %0, %2, %cst {dimension_numbers = #tpu.dot_dimension_numbers<[1], [0], [0], [1], [0, 0, 1, 1], [], []>} : vector<8x8xf32>, vector<8x256xf32>, vector<8x256xf32> -> vector<8x256xf32>
    %c0_4 = arith.constant 0 : index
    %c0_5 = arith.constant 0 : index
    %4 = vector.load %arg4[%c0_4, %c0_5] : memref<8x1xf32, #tpu.memory_space<vmem>>, vector<8x1xf32>
    %5 = vector.broadcast %4 : vector<8x1xf32> to vector<8x256xf32>
    %6 = arith.addf %3, %5 : vector<8x256xf32>
    %c0_6 = arith.constant 0 : index
    %c0_7 = arith.constant 0 : index
    %c0_8 = arith.constant 0 : index
    %7 = vector.load %arg5[%c0_6, %c0_7, %c0_8] : memref<1x8x256xf32, #tpu.memory_space<vmem>>, vector<1x8x256xf32>
    %8 = vector.shape_cast %7 : vector<1x8x256xf32> to vector<8x256xf32>
    %9 = arith.addf %6, %8 : vector<8x256xf32>
    %c0_9 = arith.constant 0 : index
    %c0_10 = arith.constant 0 : index
    %c0_11 = arith.constant 0 : index
    %10 = vector.load %arg6[%c0_9, %c0_10, %c0_11] : memref<1x8x256xf32, #tpu.memory_space<vmem>>, vector<1x8x256xf32>
    %11 = vector.shape_cast %10 : vector<1x8x256xf32> to vector<8x256xf32>
    %12 = vector.shape_cast %9 : vector<8x256xf32> to vector<1x8x256xf32>
    tpu.vector_store %arg6[%c0_9, %c0_10, %c0_11], %12 {strides = array<i32>} : memref<1x8x256xf32, #tpu.memory_space<vmem>>, vector<1x8x256xf32>,
    return
  }
  func.func @transform_0(%arg0: i32, %arg1: i32) -> (i32, i32, i32) {
    %c0_i32 = arith.constant 0 : i32
    %c0_i32_0 = arith.constant 0 : i32
    return %arg0, %c0_i32, %arg1 : i32, i32, i32
  }
  func.func @transform_1(%arg0: i32, %arg1: i32) -> (i32, i32) {
    %c0_i32 = arith.constant 0 : i32
    %c0_i32_0 = arith.constant 0 : i32
    %c0_i32_1 = arith.constant 0 : i32
    return %c0_i32, %c0_i32_0 : i32, i32
  }
  func.func @transform_2(%arg0: i32, %arg1: i32) -> (i32, i32) {
    %c0_i32 = arith.constant 0 : i32
    %c0_i32_0 = arith.constant 0 : i32
    %c0_i32_1 = arith.constant 0 : i32
    return %c0_i32, %c0_i32_0 : i32, i32
  }
  func.func @transform_3(%arg0: i32, %arg1: i32) -> (i32, i32, i32) {
    %c0_i32 = arith.constant 0 : i32
    %c0_i32_0 = arith.constant 0 : i32
    return %arg0, %c0_i32, %arg1 : i32, i32, i32
  }
  func.func @transform_4(%arg0: i32, %arg1: i32) -> (i32, i32, i32) {
    %c0_i32 = arith.constant 0 : i32
    %c0_i32_0 = arith.constant 0 : i32
    return %arg0, %c0_i32, %arg1 : i32, i32, i32
  }
}

module attributes {stable_mosaic.version = 11 : i64} {
  func.func @_pw_kernel(%arg0: i32, %arg1: i32, %arg2: memref<1x8x256xf32, #tpu.memory_space<vmem>>, %arg3: memref<32x8xf32, #tpu.memory_space<vmem>>, %arg4: memref<32x1xf32, #tpu.memory_space<vmem>>, %arg5: memref<1x32x256xf32, #tpu.memory_space<vmem>>) attributes {dimension_semantics = [#tpu.dimension_semantics<parallel>, #tpu.dimension_semantics<parallel>], iteration_bounds = array<i64: 2, 1>, scalar_prefetch = 0 : i64, scratch_operands = 0 : i64, tpu.core_type = #tpu.core_type<tc>, window_params = [{transform_indices = @transform_0, window_bounds = array<i64: 1, 8, 256>}, {pipeline_mode = #tpu.pipeline_mode<synchronous>, transform_indices = @transform_1, window_bounds = array<i64: 32, 8>}, {pipeline_mode = #tpu.pipeline_mode<synchronous>, transform_indices = @transform_2, window_bounds = array<i64: 32, 1>}, {transform_indices = @transform_3, window_bounds = array<i64: 1, 32, 256>}]} {
    %c0 = arith.constant 0 : index
    %c0_0 = arith.constant 0 : index
    %0 = vector.load %arg3[%c0, %c0_0] : memref<32x8xf32, #tpu.memory_space<vmem>>, vector<32x8xf32>
    %c0_1 = arith.constant 0 : index
    %c0_2 = arith.constant 0 : index
    %c0_3 = arith.constant 0 : index
    %1 = vector.load %arg2[%c0_1, %c0_2, %c0_3] : memref<1x8x256xf32, #tpu.memory_space<vmem>>, vector<1x8x256xf32>
    %2 = vector.shape_cast %1 : vector<1x8x256xf32> to vector<8x256xf32>
    %cst = arith.constant dense<0.000000e+00> : vector<32x256xf32>
    %3 = tpu.matmul %0, %2, %cst {dimension_numbers = #tpu.dot_dimension_numbers<[1], [0], [0], [1], [0, 0, 1, 1], [], []>} : vector<32x8xf32>, vector<8x256xf32>, vector<32x256xf32> -> vector<32x256xf32>
    %c0_4 = arith.constant 0 : index
    %c0_5 = arith.constant 0 : index
    %4 = vector.load %arg4[%c0_4, %c0_5] : memref<32x1xf32, #tpu.memory_space<vmem>>, vector<32x1xf32>
    %5 = vector.broadcast %4 : vector<32x1xf32> to vector<32x256xf32>
    %6 = arith.addf %3, %5 : vector<32x256xf32>
    %c0_6 = arith.constant 0 : index
    %c0_7 = arith.constant 0 : index
    %c0_8 = arith.constant 0 : index
    %7 = vector.load %arg5[%c0_6, %c0_7, %c0_8] : memref<1x32x256xf32, #tpu.memory_space<vmem>>, vector<1x32x256xf32>
    %8 = vector.shape_cast %7 : vector<1x32x256xf32> to vector<32x256xf32>
    %9 = vector.shape_cast %6 : vector<32x256xf32> to vector<1x32x256xf32>
    tpu.vector_store %arg5[%c0_6, %c0_7, %c0_8], %9 {strides = array<i32>} : memref<1x32x256xf32, #tpu.memory_space<vmem>>, vector<1x32x256xf32>,
    return
  }
  func.func @transform_0(%arg0: i32, %arg1: i32) -> (i32, i32, i32) {
    %c0_i32 = arith.constant 0 : i32
    %c0_i32_0 = arith.constant 0 : i32
    return %arg0, %c0_i32, %arg1 : i32, i32, i32
  }
  func.func @transform_1(%arg0: i32, %arg1: i32) -> (i32, i32) {
    %c0_i32 = arith.constant 0 : i32
    %c0_i32_0 = arith.constant 0 : i32
    %c0_i32_1 = arith.constant 0 : i32
    return %c0_i32, %c0_i32_0 : i32, i32
  }
  func.func @transform_2(%arg0: i32, %arg1: i32) -> (i32, i32) {
    %c0_i32 = arith.constant 0 : i32
    %c0_i32_0 = arith.constant 0 : i32
    %c0_i32_1 = arith.constant 0 : i32
    return %c0_i32, %c0_i32_0 : i32, i32
  }
  func.func @transform_3(%arg0: i32, %arg1: i32) -> (i32, i32, i32) {
    %c0_i32 = arith.constant 0 : i32
    %c0_i32_0 = arith.constant 0 : i32
    return %arg0, %c0_i32, %arg1 : i32, i32, i32
  }
}

module attributes {stable_mosaic.version = 11 : i64} {
  func.func @_pw_res_kernel(%arg0: i32, %arg1: i32, %arg2: memref<1x16x256xf32, #tpu.memory_space<vmem>>, %arg3: memref<8x16xf32, #tpu.memory_space<vmem>>, %arg4: memref<8x1xf32, #tpu.memory_space<vmem>>, %arg5: memref<1x8x256xf32, #tpu.memory_space<vmem>>, %arg6: memref<1x8x256xf32, #tpu.memory_space<vmem>>) attributes {dimension_semantics = [#tpu.dimension_semantics<parallel>, #tpu.dimension_semantics<parallel>], iteration_bounds = array<i64: 2, 1>, scalar_prefetch = 0 : i64, scratch_operands = 0 : i64, tpu.core_type = #tpu.core_type<tc>, window_params = [{transform_indices = @transform_0, window_bounds = array<i64: 1, 16, 256>}, {pipeline_mode = #tpu.pipeline_mode<synchronous>, transform_indices = @transform_1, window_bounds = array<i64: 8, 16>}, {pipeline_mode = #tpu.pipeline_mode<synchronous>, transform_indices = @transform_2, window_bounds = array<i64: 8, 1>}, {transform_indices = @transform_3, window_bounds = array<i64: 1, 8, 256>}, {transform_indices = @transform_4, window_bounds = array<i64: 1, 8, 256>}]} {
    %c0 = arith.constant 0 : index
    %c0_0 = arith.constant 0 : index
    %0 = vector.load %arg3[%c0, %c0_0] : memref<8x16xf32, #tpu.memory_space<vmem>>, vector<8x16xf32>
    %c0_1 = arith.constant 0 : index
    %c0_2 = arith.constant 0 : index
    %c0_3 = arith.constant 0 : index
    %1 = vector.load %arg2[%c0_1, %c0_2, %c0_3] : memref<1x16x256xf32, #tpu.memory_space<vmem>>, vector<1x16x256xf32>
    %2 = vector.shape_cast %1 : vector<1x16x256xf32> to vector<16x256xf32>
    %cst = arith.constant dense<0.000000e+00> : vector<8x256xf32>
    %3 = tpu.matmul %0, %2, %cst {dimension_numbers = #tpu.dot_dimension_numbers<[1], [0], [0], [1], [0, 0, 1, 1], [], []>} : vector<8x16xf32>, vector<16x256xf32>, vector<8x256xf32> -> vector<8x256xf32>
    %c0_4 = arith.constant 0 : index
    %c0_5 = arith.constant 0 : index
    %4 = vector.load %arg4[%c0_4, %c0_5] : memref<8x1xf32, #tpu.memory_space<vmem>>, vector<8x1xf32>
    %5 = vector.broadcast %4 : vector<8x1xf32> to vector<8x256xf32>
    %6 = arith.addf %3, %5 : vector<8x256xf32>
    %c0_6 = arith.constant 0 : index
    %c0_7 = arith.constant 0 : index
    %c0_8 = arith.constant 0 : index
    %7 = vector.load %arg5[%c0_6, %c0_7, %c0_8] : memref<1x8x256xf32, #tpu.memory_space<vmem>>, vector<1x8x256xf32>
    %8 = vector.shape_cast %7 : vector<1x8x256xf32> to vector<8x256xf32>
    %9 = arith.addf %6, %8 : vector<8x256xf32>
    %c0_9 = arith.constant 0 : index
    %c0_10 = arith.constant 0 : index
    %c0_11 = arith.constant 0 : index
    %10 = vector.load %arg6[%c0_9, %c0_10, %c0_11] : memref<1x8x256xf32, #tpu.memory_space<vmem>>, vector<1x8x256xf32>
    %11 = vector.shape_cast %10 : vector<1x8x256xf32> to vector<8x256xf32>
    %12 = vector.shape_cast %9 : vector<8x256xf32> to vector<1x8x256xf32>
    tpu.vector_store %arg6[%c0_9, %c0_10, %c0_11], %12 {strides = array<i32>} : memref<1x8x256xf32, #tpu.memory_space<vmem>>, vector<1x8x256xf32>,
    return
  }
  func.func @transform_0(%arg0: i32, %arg1: i32) -> (i32, i32, i32) {
    %c0_i32 = arith.constant 0 : i32
    %c0_i32_0 = arith.constant 0 : i32
    return %arg0, %c0_i32, %arg1 : i32, i32, i32
  }
  func.func @transform_1(%arg0: i32, %arg1: i32) -> (i32, i32) {
    %c0_i32 = arith.constant 0 : i32
    %c0_i32_0 = arith.constant 0 : i32
    %c0_i32_1 = arith.constant 0 : i32
    return %c0_i32, %c0_i32_0 : i32, i32
  }
  func.func @transform_2(%arg0: i32, %arg1: i32) -> (i32, i32) {
    %c0_i32 = arith.constant 0 : i32
    %c0_i32_0 = arith.constant 0 : i32
    %c0_i32_1 = arith.constant 0 : i32
    return %c0_i32, %c0_i32_0 : i32, i32
  }
  func.func @transform_3(%arg0: i32, %arg1: i32) -> (i32, i32, i32) {
    %c0_i32 = arith.constant 0 : i32
    %c0_i32_0 = arith.constant 0 : i32
    return %arg0, %c0_i32, %arg1 : i32, i32, i32
  }
  func.func @transform_4(%arg0: i32, %arg1: i32) -> (i32, i32, i32) {
    %c0_i32 = arith.constant 0 : i32
    %c0_i32_0 = arith.constant 0 : i32
    return %arg0, %c0_i32, %arg1 : i32, i32, i32
  }
}

</mosaic_0001>

<bundles_post_ra>
// kernel: transformer_block.7
= control target key start
LH: loop header
LB: loop body
LE: loop exit
PB: predicated region body
PF: predicated region fallthrough
CT: control target
= control target key end

     0   :  { %s448_s12 = smov 0   ;;  %s450_s13 = smov 0   ;;  %s494_s0 = inlined_call_operand.vmem [shape: f32[2,8,256], index: 0, kind: input, shape index: {}]   ;;  %s495_s1 = inlined_call_operand.vmem [shape: f32[8,1], index: 1, kind: input, shape index: {}]   ;;  %s496_s2 = inlined_call_operand.vmem [shape: f32[8,1], index: 2, kind: input, shape index: {}]   ;;  %s497_s3 = inlined_call_operand.vmem [shape: f32[2,8,256], index: 3, kind: output, shape index: {}]  }
   0x1   :  { %s452_s14 = smov 0  }
   0x2 LB: > { %s25_s15 = sadd.s32 1, %s421_s13  ;;  %p364_p0 = scmp.ge.s32.totalorder %s425_s14, 1  ;;  %s425_s14 = sphi %s452_s14, %s13_s14   ;;  %s421_s13 = sphi %s450_s13, %s499_s13   ;;  %s417_s12 = sphi %s448_s12, %s498_s12  }
   0x3   : > { %p27_p1 = scmp.ge.s32.totalorder %s25_s15, 2  ;;  %p158_p2 = scmp.lt.s32.totalorder %s425_s14, 3 }
   0x5   : > { %s501_s15 = smov (%p27_p1, %s25_s15), 0  ;;  %p159_p3 = pnand %p364_p0, %p158_p2 }
   0x6   : > { %v255_v0 = vld [vmem:[%s495_s1] sm:$0xff] (!%p159_p3)  ;;  %v427_v1 = vmov (!%p159_p3), 0   ;;  %p191_p4 = scmp.lt.s32.totalorder (!%p159_p3), %s417_s12, 1 }
   0x7   : > { %162 = sbr.rel (%p159_p3) target bundleno = 143 (0x8f), region = 32  ;;  %398 = vset.pattern.permute.xlu0 (!%p159_p3), %v427_v1  ;;  %v263_v2 = vld [vmem:[%s496_s2] sm:$0xff] (!%p159_p3) }
   0x8   : > { %258 = vperm.xlu0 (!%p159_p3), %398, %v255_v0  }
   0xc   : > { %266 = vperm.xlu0 (!%p159_p3), %398, %v263_v2  }
   0xe   : > { %s503_s12 = smov (!%p191_p4, %s417_s12), 1 }
   0xf   : > { %s371_s20 = sshll.u32 %s503_s12, 4 }
  0x10   : > { %s198_s23 = scalar_lea.vmem %s494_s0, %s371_s20  ;;  %s208_s26 = scalar_lea.vmem %s497_s3, %s371_s20 }
  0x11   : > { %v210_v3 = vld [vmem:[%s198_s23] sm:$0xff]  ;;  %v211_v4 = vld [vmem:[%s198_s23 + $0x8] sm:$0xff] }
  0x12   : > { %v212_v5 = vrot.slane %v210_v3, 4  ;;  %v227_v6 = vmul.f32 %v210_v3, %v210_v3  ;;  %v218_v7 = vrot.slane %v211_v4, 4  ;;  %v228_v8 = vmul.f32 %v211_v4, %v211_v4 }
  0x14   : > { %v213_v9 = vadd.f32 %v212_v5, %v210_v3  ;;  %v229_v10 = vrot.slane %v227_v6, 4  ;;  %v219_v11 = vadd.f32 %v218_v7, %v211_v4  ;;  %v235_v12 = vrot.slane %v228_v8, 4 }
  0x16   : > { %v214_v13 = vrot.slane %v213_v9, 2  ;;  %v230_v14 = vadd.f32 %v229_v10, %v227_v6  ;;  %v220_v15 = vrot.slane %v219_v11, 2  ;;  %v236_v16 = vadd.f32 %v235_v12, %v228_v8 }
  0x18   : > { %v215_v17 = vadd.f32 %v214_v13, %v213_v9  ;;  %v231_v18 = vrot.slane %v230_v14, 2  ;;  %v221_v19 = vadd.f32 %v220_v15, %v219_v11  ;;  %v237_v20 = vrot.slane %v236_v16, 2 }
  0x1a   : > { %v216_v21 = vrot.slane %v215_v17, 1  ;;  %v232_v22 = vadd.f32 %v231_v18, %v230_v14  ;;  %v222_v23 = vrot.slane %v221_v19, 1  ;;  %v238_v24 = vadd.f32 %v237_v20, %v236_v16 }
  0x1c   : > { %v217_v25 = vadd.f32 %v216_v21, %v215_v17  ;;  %v233_v26 = vrot.slane %v232_v22, 1  ;;  %v223_v27 = vadd.f32 %v222_v23, %v221_v19  ;;  %v239_v28 = vrot.slane %v238_v24, 1 }
  0x1e   : > { %v225_v29 = vmul.f32 0.125, %v217_v25  ;;  %v234_v30 = vadd.f32 %v233_v26, %v232_v22  ;;  %v226_v31 = vmul.f32 0.125, %v223_v27  ;;  %v240_v32 = vadd.f32 %v239_v28, %v238_v24 }
  0x20   : > { %v241_v33 = vmul.f32 0.125, %v234_v30  ;;  %v243_v34 = vmul.f32 %v225_v29, %v225_v29  ;;  %v242_v35 = vmul.f32 0.125, %v240_v32  ;;  %v244_v36 = vmul.f32 %v226_v31, %v226_v31 }
  0x21   : > { %v247_v42 = vsub.f32 %v210_v3, %v225_v29  ;;  %v248_v43 = vsub.f32 %v211_v4, %v226_v31 }
  0x22   : > { %v245_v37 = vsub.f32 %v241_v33, %v243_v34  ;;  %v246_v38 = vsub.f32 %v242_v35, %v244_v36 }
  0x24   : > { %v249_v39 = vadd.f32 1e-05, %v245_v37  ;;  %v250_v40 = vadd.f32 1e-05, %v246_v38 }
  0x26   : > { %399 = vrsqrt.f32 %v249_v39 }
  0x27   : > { %401 = vrsqrt.f32 %v250_v40 }
  0x30   : > { %v400_v41 = vpop.eup %399 }
  0x31   : > { %v402_v44 = vpop.eup %401  ;;  %v253_v45 = vmul.f32 %v400_v41, %v247_v42 }
  0x32   : > { %v254_v46 = vmul.f32 %v402_v44, %v248_v43 }
  0x87   : > { %v259_v47 = vpop.permute.xlu0 %258 }
  0x88   : > { %v261_v48 = vmul.f32 %v259_v47, %v253_v45  ;;  %v262_v49 = vmul.f32 %v259_v47, %v254_v46 }
  0x8b   : > { %v267_v50 = vpop.permute.xlu0 %266 }
  0x8c   : > { %v269_v51 = vadd.f32 %v267_v50, %v261_v48  ;;  %v270_v52 = vadd.f32 %v267_v50, %v262_v49 }
  0x8e   : > { %271 = vst [vmem:[%s208_s26] sm:$0xff] %v269_v51  ;;  %272 = vst [vmem:[%s208_s26 + $0x8] sm:$0xff] %v270_v52 }
  0x8f PF: > { %s13_s14 = sadd.s32 1, %s425_s14   ;;  %s498_s12 = smov %s421_s13 }
  0x90   : > { %p10_p5 = scmp.ge.s32.totalorder %s13_s14, 4   ;;  %s499_s13 = smov %s501_s15 }
  0x92   :  { %12 = sbr.rel (!%p10_p5) target bundleno = 2 (0x2), region = 62 }

// kernel: transformer_block.8
= control target key start
LH: loop header
LB: loop body
LE: loop exit
PB: predicated region body
PF: predicated region fallthrough
CT: control target
= control target key end

     0   :  { %s510_s12 = smov 0   ;;  %s512_s13 = smov 0   ;;  %s561_s0 = inlined_call_operand.vmem [shape: f32[2,8,256], index: 0, kind: input, shape index: {}]   ;;  %s562_s1 = inlined_call_operand.vmem [shape: f32[24,8], index: 1, kind: input, shape index: {}]   ;;  %s563_s2 = inlined_call_operand.vmem [shape: f32[24,1], index: 2, kind: input, shape index: {}]   ;;  %s564_s3 = inlined_call_operand.vmem [shape: f32[2,24,256], index: 3, kind: output, shape index: {}]  }
   0x1   :  { %s514_s14 = smov 0  }
   0x2 LB: > { %s25_s15 = sadd.s32 1, %s482_s13  ;;  %p423_p0 = scmp.ge.s32.totalorder %s486_s14, 1  ;;  %s486_s14 = sphi %s514_s14, %s13_s14   ;;  %s482_s13 = sphi %s512_s13, %s566_s13   ;;  %s478_s12 = sphi %s510_s12, %s565_s12  }
   0x3   : > { %p27_p1 = scmp.ge.s32.totalorder %s25_s15, 2  ;;  %p158_p2 = scmp.lt.s32.totalorder %s486_s14, 3 }
   0x5   : > { %s568_s15 = smov (%p27_p1, %s25_s15), 0  ;;  %p159_p3 = pnand %p423_p0, %p158_p2 }
   0x6   : > { %p191_p4 = scmp.lt.s32.totalorder (!%p159_p3), %s478_s12, 1  ;;  %v488_v0 = vmov (!%p159_p3), 0.0   ;;  %v215_v1 = vld [vmem:[%s563_s2] sm:$0xff] (!%p159_p3)  ;;  %v217_v2 = vld [vmem:[%s563_s2 + $0x10] sm:$0xff] (!%p159_p3)  ;;  %v489_v3 = vmov (!%p159_p3), 0   ;;  %vm233_vm0 = vcmask (!%p159_p3), 64512  }
   0x7   : > { %162 = sbr.rel (%p159_p3) target bundleno = 240 (0xf0), region = 32  ;;  %307 = vmatprep.mubr.f32.mxu0 (!%p159_p3), %v488_v0  ;;  %313 = vmatprep.mubr.f32.mxu1 (!%p159_p3), %v488_v0  ;;  %v210_v4 = vld [vmem:[%s562_s1] sm:$0xff] (!%p159_p3)  ;;  %v211_v7 = vld [vmem:[%s562_s1 + $0x8] sm:$0xff] (!%p159_p3)  ;;  %v212_v9 = vld [vmem:[%s562_s1 + $0x10] sm:$0xff] (!%p159_p3) }
   0x8   : > { %462 = vset.pattern.permute.xlu0 (!%p159_p3), %v489_v3  ;;  %463 = vset.pattern.permute.xlu1 (!%p159_p3), %v489_v3  ;;  %v216_v8 = vld [vmem:[%s563_s2 + $0x8] sm:$0xff] (!%p159_p3) }
   0x9   : > { %220 = vperm.xlu0 (!%p159_p3), %462, %v215_v1   ;;  %230 = vperm.xlu1 (!%p159_p3), %463, %v217_v2  }
   0xd   : > { %225 = vperm.xlu0 (!%p159_p3), %462, %v216_v8  }
   0xe   : > { %s570_s12 = smov (!%p191_p4, %s478_s12), 1 }
   0xf   : > { %s432_s20 = sshll.u32 %s570_s12, 4  ;;  %s435_s5 = smul.u32 48, %s570_s12 }
  0x10   : > { %s198_s23 = scalar_lea.vmem %s561_s0, %s432_s20 }
  0x11   : > { %v214_v5 = vld [vmem:[%s198_s23 + $0x8] sm:$0xff]  ;;  %v213_v6 = vld [vmem:[%s198_s23] sm:$0xff]  ;;  %s208_s8 = scalar_lea.vmem %s564_s3, %s435_s5 }
  0x12   : > { %243 = vmatprep.subr.mxu0 %v214_v5  ;;  %433 = vmatprep.subr.mxu1 %v214_v5 }
  0x13   : > { %244 = vmatpush1.msra.mxu0 %v213_v6  ;;  %434 = vmatpush1.msra.mxu1 %v213_v6 }
  0x14   : > { %427 = vmatmul.mubr.msk.f32.vlgmr.msra.gmra.mrb[0].mxu0 %vm233_vm0, %v210_v4  ;;  %428 = vmatmul.mubr.msk.f32.vlgmr.msra.gmra.mrb[0].mxu1 %vm233_vm0, %v211_v7 }
  0x15   : > { %319 = vmatprep.mubr.f32.mxu1 %v488_v0 }
  0x18   : > { %429 = vmatmul.mubr.msk.f32.gmra.mrb[2].mxu1 %vm233_vm0, %v212_v9 }
  0x88   : > { %v221_v10 = vpop.permute.xlu0 %220  ;;  %v231_v20 = vpop.permute.xlu1 %230 }
  0x8c   : > { %v226_v11 = vpop.permute.xlu0 %225 }
  0xe7   : > { %v309_v12 = vpop.f32.mrb[0].mxu0  ;;  %v315_v13 = vpop.f32.mrb[0].mxu1 }
  0xe8   : > { %v310_v14 = vadd.f32 %v309_v12, %v221_v10  ;;  %v316_v15 = vadd.f32 %v315_v13, %v226_v11  ;;  %v311_v16 = vpop.f32.mrb[1].mxu0  ;;  %v317_v17 = vpop.f32.mrb[1].mxu1 }
  0xe9   : > { %v312_v18 = vadd.f32 %v311_v16, %v221_v10  ;;  %v318_v19 = vadd.f32 %v317_v17, %v226_v11 }
  0xea   : > { %326 = vst [vmem:[%s208_s8] sm:$0xff] %v310_v14  ;;  %328 = vst [vmem:[%s208_s8 + $0x10] sm:$0xff] %v316_v15 }
  0xeb   : > { %327 = vst [vmem:[%s208_s8 + $0x8] sm:$0xff] %v312_v18  ;;  %329 = vst [vmem:[%s208_s8 + $0x18] sm:$0xff] %v318_v19  ;;  %v321_v21 = vpop.f32.mrb[2].mxu1 }
  0xec   : > { %v322_v22 = vadd.f32 %v321_v21, %v231_v20  ;;  %v323_v23 = vpop.f32.mrb[3].mxu1 }
  0xed   : > { %v324_v24 = vadd.f32 %v323_v23, %v231_v20 }
  0xee   : > { %330 = vst [vmem:[%s208_s8 + $0x20] sm:$0xff] %v322_v22 }
  0xef   : > { %331 = vst [vmem:[%s208_s8 + $0x28] sm:$0xff] %v324_v24 }
  0xf0 PF: > { %s13_s14 = sadd.s32 1, %s486_s14   ;;  %s565_s12 = smov %s482_s13 }
  0xf1   : > { %p10_p5 = scmp.ge.s32.totalorder %s13_s14, 4   ;;  %s566_s13 = smov %s568_s15 }
  0xf3   :  { %12 = sbr.rel (!%p10_p5) target bundleno = 2 (0x2), region = 62 }

// kernel: transformer_block.10
= control target key start
LH: loop header
LB: loop body
LE: loop exit
PB: predicated region body
PF: predicated region fallthrough
CT: control target
= control target key end

     0   :  { %s563_s15 = smov 0   ;;  %s565_s16 = smov 0   ;;  %s605_s0 = inlined_call_operand.vmem [shape: f32[2,8,256], index: 0, kind: input, shape index: {}]   ;;  %s606_s1 = inlined_call_operand.vmem [shape: f32[8,8], index: 1, kind: input, shape index: {}]   ;;  %s607_s2 = inlined_call_operand.vmem [shape: f32[8,1], index: 2, kind: input, shape index: {}]   ;;  %s608_s3 = inlined_call_operand.vmem [shape: f32[2,8,256], index: 3, kind: input, shape index: {}]   ;;  %s609_s4 = inlined_call_operand.vmem [shape: f32[2,8,256], index: 4, kind: output, shape index: {}]  }
   0x1   :  { %s567_s17 = smov 0  }
   0x2 LB: > { %s26_s18 = sadd.s32 1, %s530_s16  ;;  %p472_p0 = scmp.ge.s32.totalorder %s534_s17, 1  ;;  %s534_s17 = sphi %s567_s17, %s14_s17   ;;  %s530_s16 = sphi %s565_s16, %s611_s16   ;;  %s526_s15 = sphi %s563_s15, %s610_s15  }
   0x3   : > { %p28_p1 = scmp.ge.s32.totalorder %s26_s18, 2  ;;  %p200_p2 = scmp.lt.s32.totalorder %s534_s17, 3 }
   0x5   : > { %s613_s18 = smov (%p28_p1, %s26_s18), 0  ;;  %p201_p3 = pnand %p472_p0, %p200_p2 }
   0x6   : > { %p244_p4 = scmp.lt.s32.totalorder (!%p201_p3), %s526_s15, 1  ;;  %v276_v0 = vld [vmem:[%s607_s2] sm:$0xff] (!%p201_p3)  ;;  %v536_v1 = vmov (!%p201_p3), 0.0   ;;  %v537_v2 = vmov (!%p201_p3), 0   ;;  %vm282_vm0 = vcmask (!%p201_p3), 64512  }
   0x7   : > { %204 = sbr.rel (%p201_p3) target bundleno = 238 (0xee), region = 36  ;;  %350 = vmatprep.mubr.f32.mxu0 (!%p201_p3), %v536_v1  ;;  %511 = vset.pattern.permute.xlu0 (!%p201_p3), %v537_v2  ;;  %v273_v5 = vld [vmem:[%s606_s1] sm:$0xff] (!%p201_p3) }
   0x8   : > { %279 = vperm.xlu0 (!%p201_p3), %511, %v276_v0  }
   0xe   : > { %s615_s15 = smov (!%p244_p4, %s526_s15), 1 }
   0xf   : > { %s482_s21 = sshll.u32 %s615_s15, 4 }
  0x10   : > { %s251_s24 = scalar_lea.vmem %s605_s0, %s482_s21  ;;  %s261_s29 = scalar_lea.vmem %s608_s3, %s482_s21 }
  0x11   : > { %v275_v3 = vld [vmem:[%s251_s24 + $0x8] sm:$0xff]  ;;  %v274_v4 = vld [vmem:[%s251_s24] sm:$0xff]  ;;  %s271_s6 = scalar_lea.vmem %s609_s4, %s482_s21 }
  0x12   : > { %286 = vmatprep.subr.mxu0 %v275_v3  ;;  %v357_v8 = vld [vmem:[%s261_s29] sm:$0xff]  ;;  %v358_v11 = vld [vmem:[%s261_s29 + $0x8] sm:$0xff] }
  0x13   : > { %287 = vmatpush1.msra.mxu0 %v274_v4 }
  0x14   : > { %479 = vmatmul.mubr.msk.f32.vlgmr.msra.gmra.mrb[0].mxu0 %vm282_vm0, %v273_v5 }
  0x87   : > { %v280_v6 = vpop.permute.xlu0 %279 }
  0xe7   : > { %v352_v7 = vpop.f32.mrb[0].mxu0 }
  0xe8   : > { %v353_v9 = vadd.f32 %v352_v7, %v280_v6  ;;  %v354_v10 = vpop.f32.mrb[1].mxu0 }
  0xe9   : > { %v355_v12 = vadd.f32 %v354_v10, %v280_v6 }
  0xea   : > { %v359_v13 = vadd.f32 %v357_v8, %v353_v9 }
  0xeb   : > { %v360_v14 = vadd.f32 %v358_v11, %v355_v12 }
  0xec   : > { %361 = vst [vmem:[%s271_s6] sm:$0xff] %v359_v13 }
  0xed   : > { %362 = vst [vmem:[%s271_s6 + $0x8] sm:$0xff] %v360_v14 }
  0xee PF: > { %s14_s17 = sadd.s32 1, %s534_s17   ;;  %s610_s15 = smov %s530_s16 }
  0xef   : > { %p11_p5 = scmp.ge.s32.totalorder %s14_s17, 4   ;;  %s611_s16 = smov %s613_s18 }
  0xf1   :  { %13 = sbr.rel (!%p11_p5) target bundleno = 2 (0x2), region = 69 }

// kernel: transformer_block.9
= control target key start
LH: loop header
LB: loop body
LE: loop exit
PB: predicated region body
PF: predicated region fallthrough
CT: control target
= control target key end

     0   :  { %s856_s15 = smov 0   ;;  %s858_s16 = smov 0   ;;  %s928_s0 = inlined_call_operand.vmem [shape: f32[2,2,4,256], index: 0, kind: input, shape index: {}]   ;;  %s929_s1 = inlined_call_operand.vmem [shape: f32[2,2,4,256], index: 1, kind: input, shape index: {}]   ;;  %s930_s2 = inlined_call_operand.vmem [shape: f32[2,2,4,256], index: 2, kind: input, shape index: {}]   ;;  %s931_s3 = inlined_call_operand.vmem [shape: f32[2,1,1], index: 3, kind: input, shape index: {}]   ;;  %s932_s4 = inlined_call_operand.vmem [shape: f32[2,2,4,256], index: 4, kind: output, shape index: {}]  }
   0x1   :  { %s860_s17 = smov 0   ;;  %s862_s18 = smov 0  }
   0x2   :  { %s864_s19 = smov 0  }
   0x3 LB: > { %s23_s20 = sadd.s32 1, %s818_s17  ;;  %s26_s21 = sadd.s32 1, %s822_s18  ;;  %s826_s19 = sphi %s864_s19, %s14_s19   ;;  %s822_s18 = sphi %s862_s18, %s936_s18   ;;  %s818_s17 = sphi %s860_s17, %s935_s17   ;;  %s814_s16 = sphi %s858_s16, %s934_s16   ;;  %s810_s15 = sphi %s856_s15, %s933_s15  }
   0x4   : > { %p24_p0 = scmp.ge.s32.totalorder %s23_s20, 2  ;;  %p711_p1 = scmp.ge.s32.totalorder %s826_s19, 1 }
   0x5   : > { %p222_p2 = scmp.lt.s32.totalorder %s826_s19, 5 }
   0x6   : > { %s938_s20 = smov (%p24_p0, %s23_s20), 0  ;;  %s940_s21 = smov (!%p24_p0, %s26_s21), %s822_s18 }
   0x7   : > { %p223_p3 = pnand %p711_p1, %p222_p2  ;;  %p28_p4 = scmp.ge.s32.totalorder %s940_s21, 2 }
   0x8   : > { %p277_p5 = scmp.lt.s32.totalorder (!%p223_p3), %s814_s16, 1  ;;  %p279_p6 = scmp.lt.s32.totalorder (!%p223_p3), %s810_s15, 1  ;;  %vm323_vm0 = vcmask (!%p223_p3), 1043456   ;;  %v828_v12 = vmov (!%p223_p3), 0   ;;  %v829_v16 = vmov (!%p223_p3), 839922192   ;;  %v341_v18 = vlaneseq (!%p223_p3) }
   0x9   : > { %s942_s21 = smov (%p28_p4, %s940_s21), 0  ;;  %226 = sbr.rel (%p223_p3) target bundleno = 954 (0x3ba), region = 36 }
   0xa   : > { %773 = vset.pattern.permute.xlu1 (!%p223_p3), %v828_v12  ;;  %774 = vset.pattern.permute.xlu0 (!%p223_p3), %v828_v12  ;;  %v339_v17 = vunpack.c.l.s4 (!%p223_p3), %v829_v16  ;;  %v342_v20 = vshrl.u32 (!%p223_p3), %v341_v18, 7  ;;  %vm463_vm5 = vcmask (!%p223_p3), 27648   ;;  %v830_v53 = vmov (!%p223_p3), 0.0  }
   0xb   : > { %549 = vmatprep.mubr.f32.mxu1 (!%p223_p3), %v830_v53  ;;  %vm477_vm6 = vcmask (!%p223_p3), 31744  }
   0xc   : > { %v340_v19 = vunpack.c.0.s8 (!%p223_p3), %v339_v17 }
   0xe   : > { %v343_v25 = vsub.s32 (!%p223_p3), %v340_v19, %v342_v20 }
  0x10   : > { %s944_s16 = smov (!%p277_p5, %s814_s16), 1  ;;  %s946_s15 = smov (!%p279_p6, %s810_s15), 1 }
  0x11   : > { %s713_s22 = sshll.u32 %s944_s16, 2  ;;  %s712_s23 = sshll.u32 %s946_s15, 1 }
  0x12   : > { %s283_s24 = sadd.s32 %s713_s22, %s712_s23  ;;  %s306_s8 = scalar_lea.vmem %s931_s3, %s946_s15 }
  0x13   : > { %s886_s25 = sshll.u32 %s283_s24, 2  ;;  %v724_v13 = vld [vmem:[%s306_s8] ss:$0 sm:$0xff] }
  0x14   : > { %s294_s28 = scalar_lea.vmem %s929_s1, %s886_s25  ;;  %s285_s5 = scalar_lea.vmem %s928_s0, %s886_s25  ;;  %459 = vperm.xlu1 %773, %v724_v13  }
  0x15   : > { %v317_v0 = vld [vmem:[%s294_s28] sm:$0xff]  ;;  %s303_s11 = scalar_lea.vmem %s930_s2, %s886_s25  ;;  %s315_s14 = scalar_lea.vmem %s932_s4, %s886_s25 }
  0x16   : > { %v316_v1 = vld [vmem:[%s285_s5] sm:$0xff]  ;;  %v348_v2 = vmul.f32 %v317_v0, %v317_v0 }
  0x17   : > { %v319_v3 = vmul.f32 %v316_v1, %v316_v1  ;;  %v318_v52 = vld [vmem:[%s303_s11] sm:$0xff] }
  0x18   : > { %v350_v4 = vcombine.high %v348_v2, %v348_v2  ;;  %v352_v5 = vsel %vm323_vm0, %v348_v2, 0.0  ;;  %v476_v54 = vcombine.high %v318_v52, %v318_v52 }
  0x19   : > { %v321_v6 = vcombine.high %v319_v3, %v319_v3  ;;  %v324_v8 = vsel %vm323_vm0, %v319_v3, 0.0 }
  0x1a   : > { %v353_v7 = vsel %vm323_vm0, %v350_v4, 0.0  ;;  %725 = vmatprep.subr.msk.mxu1 %vm323_vm0, %v476_v54 }
  0x1b   : > { %v325_v9 = vsel %vm323_vm0, %v321_v6, 0.0  ;;  %v354_v10 = vadd.f32 %v353_v7, %v352_v5  ;;  %726 = vmatpush1.msk.msra.mxu1 %vm323_vm0, %v318_v52 }
  0x1c   : > { %v326_v11 = vadd.f32 %v325_v9, %v324_v8 }
  0x1d   : > { %355 = vadd.xlane.f32.xlu0 %v354_v10 }
  0x21   : > { %327 = vadd.xlane.f32.xlu0 %v326_v11 }
  0x93   : > { %v460_v42 = vpop.permute.xlu1 %459 }
  0xaa   : > { %v356_v14 = vpop.xlane.xlu0 %355 }
  0xab   : > { %776 = vrsqrt.f32 %v356_v14  ;;  %vm359_vm1 = vcmp.eq.f32.partialorder %v356_v14, inf  ;;  %v362_v23 = vand.u32 2147483648, %v356_v14  ;;  %vm361_vm2 = vcmp.eq.f32.partialorder %v356_v14, 0.0 }
  0xae   : > { %v328_v15 = vpop.xlane.xlu0 %327 }
  0xaf   : > { %778 = vrsqrt.f32 %v328_v15  ;;  %vm331_vm3 = vcmp.eq.f32.partialorder %v328_v15, inf  ;;  %v334_v30 = vand.u32 2147483648, %v328_v15  ;;  %vm333_vm4 = vcmp.eq.f32.partialorder %v328_v15, 0.0 }
  0xb5   : > { %v777_v21 = vpop.eup %776 }
  0xb6   : > { %v358_v22 = vmul.f32 %v777_v21, %v356_v14 }
  0xb8   : > { %v360_v24 = vsel %vm359_vm1, %v356_v14, %v358_v22 }
  0xb9   : > { %v779_v26 = vpop.eup %778  ;;  %v363_v27 = vsel %vm361_vm2, %v362_v23, %v360_v24 }
  0xba   : > { %v364_v28 = vmax.f32 %v363_v27, 1e-12  ;;  %v330_v29 = vmul.f32 %v779_v26, %v328_v15 }
  0xbc   : > { %v332_v31 = vsel %vm331_vm3, %v328_v15, %v330_v29  ;;  %v372_v32 = vrot.slane %v364_v28, %v343_v25 }
  0xbd   : > { %v335_v33 = vsel %vm333_vm4, %v334_v30, %v332_v31 }
  0xbe   : > { %v336_v34 = vmax.f32 %v335_v33, 1e-12  ;;  %780 = vrcp.f32 %v372_v32 }
  0xc0   : > { %v344_v35 = vrot.slane %v336_v34, %v343_v25 }
  0xc2   : > { %782 = vrcp.f32 %v344_v35 }
  0xc8   : > { %v781_v36 = vpop.eup %780 }
  0xc9   : > { %v375_v37 = vmul.f32 %v781_v36, %v317_v0 }
  0xcb   : > { %v380_v38 = vcombine.high %v375_v37, %v375_v37 }
  0xcc   : > { %v783_v39 = vpop.eup %782 }
  0xcd   : > { %382 = vmatprep.subr.mxu0 %v380_v38  ;;  %v347_v40 = vmul.f32 %v783_v39, %v316_v1 }
  0xce   : > { %383 = vmatpush1.xpose.msra.mxu0 %v375_v37 }
  0xcf   : > { %v377_v41 = vcombine.high %v347_v40, %v347_v40 }
  0xd1   : > { %446 = vmatprep.mubr.f32.mxu0 %v377_v41 }
  0xd2   : > { %447 = vmatmul.mubr.f32.vlgmr.msra.gmra.mrb[0].mxu0 %v347_v40 }
 0x1a5   : > { %v448_v43 = vpop.f32.mrb[0].mxu0 }
 0x1a6   : > { %v462_v44 = vmul.f32 %v460_v42, %v448_v43  ;;  %v450_v45 = vpop.f32.mrb[1].mxu0 }
 0x1a8   : > { %v464_v46 = vsel %vm463_vm5, %v462_v44, -inf }
 0x1a9   : > { %465 = vmax.xlane.f32.xlu1 %v464_v46 }
 0x236   : > { %v466_v47 = vpop.xlane.xlu1 %465 }
 0x237   : > { %v467_v48 = vsub.f32 %v462_v44, %v466_v47 }
 0x239   : > { %v468_v49 = vmul.f32 1.442695, %v467_v48 }
 0x23b   : > { %784 = vpow2.f32 %v468_v49 }
 0x245   : > { %v785_v50 = vpop.eup %784 }
 0x246   : > { %v470_v51 = vsel %vm463_vm5, %v785_v50, 0.0 }
 0x247   : > { %471 = vadd.xlane.f32.xlu0 %v470_v51 }
 0x2d4   : > { %v472_v55 = vpop.xlane.xlu0 %471 }
 0x2d5   : > { %786 = vrcp.f32 %v472_v55 }
 0x2df   : > { %v787_v56 = vpop.eup %786 }
 0x2e0   : > { %v474_v57 = vmul.f32 %v787_v56, %v785_v50 }
 0x2e2   : > { %727 = vmatmul.mubr.msk.f32.vlgmr.msra.gmra.mrb[0].mxu1 %vm477_vm6, %v474_v57 }
 0x3b5   : > { %v551_v58 = vpop.f32.mrb[0].mxu1 }
 0x3b6   : > { %v553_v59 = vpop.f32.mrb[1].mxu1 }
 0x3b7   : > { %v558_v60 = vcombine.low %v551_v58, %v553_v59 }
 0x3b9   : > { %560 = vst [vmem:[%s315_s14] sm:$0xff] %v558_v60 }
 0x3ba PF: > { %s14_s19 = sadd.s32 1, %s826_s19   ;;  %s933_s15 = smov %s818_s17 }
 0x3bb   : > { %p11_p7 = scmp.ge.s32.totalorder %s14_s19, 6   ;;  %s934_s16 = smov %s822_s18 }
 0x3bc   : > { %s935_s17 = smov %s938_s20  ;;  %s936_s18 = smov %s942_s21 }
 0x3bd   :  { %13 = sbr.rel (!%p11_p7) target bundleno = 3 (0x3), region = 75 }

// kernel: transformer_block.12
= control target key start
LH: loop header
LB: loop body
LE: loop exit
PB: predicated region body
PF: predicated region fallthrough
CT: control target
= control target key end

     0   :  { %s530_s12 = smov 0   ;;  %s532_s13 = smov 0   ;;  %s595_s0 = inlined_call_operand.vmem [shape: f32[2,8,256], index: 0, kind: input, shape index: {}]   ;;  %s596_s1 = inlined_call_operand.vmem [shape: f32[32,8], index: 1, kind: input, shape index: {}]   ;;  %s597_s2 = inlined_call_operand.vmem [shape: f32[32,1], index: 2, kind: input, shape index: {}]   ;;  %s598_s3 = inlined_call_operand.vmem [shape: f32[2,32,256], index: 3, kind: output, shape index: {}]  }
   0x1   :  { %s534_s14 = smov 0  }
   0x2 LB: > { %s25_s15 = sadd.s32 1, %s502_s13  ;;  %p441_p0 = scmp.ge.s32.totalorder %s506_s14, 1  ;;  %s506_s14 = sphi %s534_s14, %s13_s14   ;;  %s502_s13 = sphi %s532_s13, %s600_s13   ;;  %s498_s12 = sphi %s530_s12, %s599_s12  }
   0x3   : > { %p27_p1 = scmp.ge.s32.totalorder %s25_s15, 2  ;;  %p158_p2 = scmp.lt.s32.totalorder %s506_s14, 3 }
   0x5   : > { %s602_s15 = smov (%p27_p1, %s25_s15), 0  ;;  %p159_p3 = pnand %p441_p0, %p158_p2 }
   0x6   : > { %p191_p4 = scmp.lt.s32.totalorder (!%p159_p3), %s498_s12, 1  ;;  %v508_v0 = vmov (!%p159_p3), 0.0   ;;  %v218_v1 = vld [vmem:[%s597_s2 + $0x10] sm:$0xff] (!%p159_p3)  ;;  %v216_v2 = vld [vmem:[%s597_s2] sm:$0xff] (!%p159_p3)  ;;  %v509_v3 = vmov (!%p159_p3), 0   ;;  %vm240_vm0 = vcmask (!%p159_p3), 64512  }
   0x7   : > { %162 = sbr.rel (%p159_p3) target bundleno = 240 (0xf0), region = 32  ;;  %317 = vmatprep.mubr.f32.mxu0 (!%p159_p3), %v508_v0  ;;  %329 = vmatprep.mubr.f32.mxu1 (!%p159_p3), %v508_v0  ;;  %v210_v4 = vld [vmem:[%s596_s1] sm:$0xff] (!%p159_p3)  ;;  %v212_v7 = vld [vmem:[%s596_s1 + $0x10] sm:$0xff] (!%p159_p3)  ;;  %v219_v8 = vld [vmem:[%s597_s2 + $0x18] sm:$0xff] (!%p159_p3) }
   0x8   : > { %483 = vset.pattern.permute.xlu1 (!%p159_p3), %v509_v3  ;;  %482 = vset.pattern.permute.xlu0 (!%p159_p3), %v509_v3  ;;  %v217_v9 = vld [vmem:[%s597_s2 + $0x8] sm:$0xff] (!%p159_p3)  ;;  %v213_v11 = vld [vmem:[%s596_s1 + $0x18] sm:$0xff] (!%p159_p3) }
   0x9   : > { %232 = vperm.xlu1 (!%p159_p3), %483, %v218_v1   ;;  %222 = vperm.xlu0 (!%p159_p3), %482, %v216_v2   ;;  %v211_v10 = vld [vmem:[%s596_s1 + $0x8] sm:$0xff] (!%p159_p3) }
   0xd   : > { %237 = vperm.xlu1 (!%p159_p3), %483, %v219_v8   ;;  %227 = vperm.xlu0 (!%p159_p3), %482, %v217_v9  }
   0xe   : > { %s604_s12 = smov (!%p191_p4, %s498_s12), 1 }
   0xf   : > { %s452_s20 = sshll.u32 %s604_s12, 4  ;;  %s453_s9 = sshll.u32 %s604_s12, 6 }
  0x10   : > { %s198_s23 = scalar_lea.vmem %s595_s0, %s452_s20  ;;  %s208_s16 = scalar_lea.vmem %s598_s3, %s453_s9 }
  0x11   : > { %v215_v5 = vld [vmem:[%s198_s23 + $0x8] sm:$0xff]  ;;  %v214_v6 = vld [vmem:[%s198_s23] sm:$0xff] }
  0x12   : > { %253 = vmatprep.subr.mxu0 %v215_v5  ;;  %454 = vmatprep.subr.mxu1 %v215_v5 }
  0x13   : > { %254 = vmatpush1.msra.mxu0 %v214_v6  ;;  %455 = vmatpush1.msra.mxu1 %v214_v6 }
  0x14   : > { %446 = vmatmul.mubr.msk.f32.vlgmr.msra.gmra.mrb[0].mxu0 %vm240_vm0, %v210_v4  ;;  %448 = vmatmul.mubr.msk.f32.vlgmr.msra.gmra.mrb[0].mxu1 %vm240_vm0, %v212_v7 }
  0x15   : > { %323 = vmatprep.mubr.f32.mxu0 %v508_v0  ;;  %335 = vmatprep.mubr.f32.mxu1 %v508_v0 }
  0x18   : > { %447 = vmatmul.mubr.msk.f32.gmra.mrb[2].mxu0 %vm240_vm0, %v211_v10  ;;  %449 = vmatmul.mubr.msk.f32.gmra.mrb[2].mxu1 %vm240_vm0, %v213_v11 }
  0x88   : > { %v233_v12 = vpop.permute.xlu1 %232  ;;  %v223_v13 = vpop.permute.xlu0 %222 }
  0x8c   : > { %v238_v22 = vpop.permute.xlu1 %237  ;;  %v228_v23 = vpop.permute.xlu0 %227 }
  0xe7   : > { %v319_v14 = vpop.f32.mrb[0].mxu0  ;;  %v331_v15 = vpop.f32.mrb[0].mxu1 }
  0xe8   : > { %v320_v16 = vadd.f32 %v319_v14, %v223_v13  ;;  %v332_v17 = vadd.f32 %v331_v15, %v233_v12  ;;  %v321_v18 = vpop.f32.mrb[1].mxu0  ;;  %v333_v19 = vpop.f32.mrb[1].mxu1 }
  0xe9   : > { %v322_v20 = vadd.f32 %v321_v18, %v223_v13  ;;  %v334_v21 = vadd.f32 %v333_v19, %v233_v12 }
  0xea   : > { %342 = vst [vmem:[%s208_s16] sm:$0xff] %v320_v16  ;;  %346 = vst [vmem:[%s208_s16 + $0x20] sm:$0xff] %v332_v17 }
  0xeb   : > { %343 = vst [vmem:[%s208_s16 + $0x8] sm:$0xff] %v322_v20  ;;  %347 = vst [vmem:[%s208_s16 + $0x28] sm:$0xff] %v334_v21  ;;  %v325_v24 = vpop.f32.mrb[2].mxu0  ;;  %v337_v25 = vpop.f32.mrb[2].mxu1 }
  0xec   : > { %v326_v26 = vadd.f32 %v325_v24, %v228_v23  ;;  %v338_v27 = vadd.f32 %v337_v25, %v238_v22  ;;  %v327_v28 = vpop.f32.mrb[3].mxu0  ;;  %v339_v29 = vpop.f32.mrb[3].mxu1 }
  0xed   : > { %v328_v30 = vadd.f32 %v327_v28, %v228_v23  ;;  %v340_v31 = vadd.f32 %v339_v29, %v238_v22 }
  0xee   : > { %344 = vst [vmem:[%s208_s16 + $0x10] sm:$0xff] %v326_v26  ;;  %348 = vst [vmem:[%s208_s16 + $0x30] sm:$0xff] %v338_v27 }
  0xef   : > { %345 = vst [vmem:[%s208_s16 + $0x18] sm:$0xff] %v328_v30  ;;  %349 = vst [vmem:[%s208_s16 + $0x38] sm:$0xff] %v340_v31 }
  0xf0 PF: > { %s13_s14 = sadd.s32 1, %s506_s14   ;;  %s599_s12 = smov %s502_s13 }
  0xf1   : > { %p10_p5 = scmp.ge.s32.totalorder %s13_s14, 4   ;;  %s600_s13 = smov %s602_s15 }
  0xf3   :  { %12 = sbr.rel (!%p10_p5) target bundleno = 2 (0x2), region = 62 }

// kernel: transformer_block.13
= control target key start
LH: loop header
LB: loop body
LE: loop exit
PB: predicated region body
PF: predicated region fallthrough
CT: control target
= control target key end

     0   :  { %s569_s15 = smov 0   ;;  %s571_s16 = smov 0   ;;  %s611_s0 = inlined_call_operand.vmem [shape: f32[2,16,256], index: 0, kind: input, shape index: {}]   ;;  %s612_s1 = inlined_call_operand.vmem [shape: f32[8,16], index: 1, kind: input, shape index: {}]   ;;  %s613_s2 = inlined_call_operand.vmem [shape: f32[8,1], index: 2, kind: input, shape index: {}]   ;;  %s614_s3 = inlined_call_operand.vmem [shape: f32[2,8,256], index: 3, kind: input, shape index: {}]   ;;  %s615_s4 = inlined_call_operand.vmem [shape: f32[2,8,256], index: 4, kind: output, shape index: {}]  }
   0x1   :  { %s573_s17 = smov 0  }
   0x2 LB: > { %s26_s18 = sadd.s32 1, %s536_s16  ;;  %p474_p0 = scmp.ge.s32.totalorder %s540_s17, 1  ;;  %s540_s17 = sphi %s573_s17, %s14_s17   ;;  %s536_s16 = sphi %s571_s16, %s617_s16   ;;  %s532_s15 = sphi %s569_s15, %s616_s15  }
   0x3   : > { %p28_p1 = scmp.ge.s32.totalorder %s26_s18, 2  ;;  %p200_p2 = scmp.lt.s32.totalorder %s540_s17, 3 }
   0x5   : > { %s619_s18 = smov (%p28_p1, %s26_s18), 0  ;;  %p201_p3 = pnand %p474_p0, %p200_p2 }
   0x6   : > { %p244_p4 = scmp.lt.s32.totalorder (!%p201_p3), %s532_s15, 1  ;;  %v278_v0 = vld [vmem:[%s613_s2] sm:$0xff] (!%p201_p3)  ;;  %v542_v1 = vmov (!%p201_p3), 0.0   ;;  %v543_v2 = vmov (!%p201_p3), 0   ;;  %vm284_vm0 = vcmask (!%p201_p3), 130048  }
   0x7   : > { %204 = sbr.rel (%p201_p3) target bundleno = 242 (0xf2), region = 36  ;;  %352 = vmatprep.mubr.f32.mxu0 (!%p201_p3), %v542_v1  ;;  %517 = vset.pattern.permute.xlu0 (!%p201_p3), %v543_v2  ;;  %v273_v9 = vld [vmem:[%s612_s1] sm:$0xff] (!%p201_p3) }
   0x8   : > { %281 = vperm.xlu0 (!%p201_p3), %517, %v278_v0  }
   0xe   : > { %s621_s15 = smov (!%p244_p4, %s532_s15), 1 }
   0xf   : > { %s484_s21 = sshll.u32 %s621_s15, 5  ;;  %s485_s27 = sshll.u32 %s621_s15, 4 }
  0x10   : > { %s251_s24 = scalar_lea.vmem %s611_s0, %s484_s21  ;;  %s261_s30 = scalar_lea.vmem %s614_s3, %s485_s27 }
  0x11   : > { %v275_v3 = vld [vmem:[%s251_s24 + $0x8] sm:$0xff]  ;;  %v277_v4 = vld [vmem:[%s251_s24 + $0x18] sm:$0xff]  ;;  %v274_v5 = vld [vmem:[%s251_s24] sm:$0xff]  ;;  %s271_s7 = scalar_lea.vmem %s615_s4, %s485_s27 }
  0x12   : > { %v487_v6 = vpack.c.bf16 %v277_v4, %v275_v3  ;;  %v276_v7 = vld [vmem:[%s251_s24 + $0x10] sm:$0xff]  ;;  %v359_v12 = vld [vmem:[%s261_s30] sm:$0xff]  ;;  %v360_v15 = vld [vmem:[%s261_s30 + $0x8] sm:$0xff] }
  0x13   : > { %v489_v8 = vpack.c.bf16 %v276_v7, %v274_v5 }
  0x14   : > { %488 = vmatprep.subr.bf16.mxu0 %v487_v6 }
  0x15   : > { %490 = vmatpush1.bf16.msra.mxu0 %v489_v8 }
  0x18   : > { %481 = vmatmul.mubr.msk.f32.vlgmr.msra.gmra.mrb[0].mxu0 %vm284_vm0, %v273_v9 }
  0x87   : > { %v282_v10 = vpop.permute.xlu0 %281 }
  0xeb   : > { %v354_v11 = vpop.f32.mrb[0].mxu0 }
  0xec   : > { %v355_v13 = vadd.f32 %v354_v11, %v282_v10  ;;  %v356_v14 = vpop.f32.mrb[1].mxu0 }
  0xed   : > { %v357_v16 = vadd.f32 %v356_v14, %v282_v10 }
  0xee   : > { %v361_v17 = vadd.f32 %v359_v12, %v355_v13 }
  0xef   : > { %v362_v18 = vadd.f32 %v360_v15, %v357_v16 }
  0xf0   : > { %363 = vst [vmem:[%s271_s7] sm:$0xff] %v361_v17 }
  0xf1   : > { %364 = vst [vmem:[%s271_s7 + $0x8] sm:$0xff] %v362_v18 }
  0xf2 PF: > { %s14_s17 = sadd.s32 1, %s540_s17   ;;  %s616_s15 = smov %s536_s16 }
  0xf3   : > { %p11_p5 = scmp.ge.s32.totalorder %s14_s17, 4   ;;  %s617_s16 = smov %s619_s18 }
  0xf5   :  { %13 = sbr.rel (!%p11_p5) target bundleno = 2 (0x2), region = 69 }

</bundles_post_ra>
